<compile_context>
chip_gen: v7x
topology: tpu7x:2x2x1
jax: 0.10.0
libtpu: 0.0.40
codegen_flags: <defaults>
</compile_context>

<pallas_src>
import jax
import jax.numpy as jnp
from jax.experimental import pallas as pl
from jax.experimental.pallas import tpu as pltpu


# ----------------------------------------------------------------------------
# Kernel: fused tap-matmul + folded BatchNorm (eval) + ReLU for one row tile.
# ----------------------------------------------------------------------------
def _upsample3d_kernel(x_ref, w_ref, scale_ref, shift_ref, o_ref):
    x = x_ref[...].astype(jnp.float32)                 # (tm, Cin)
    w = w_ref[...].astype(jnp.float32)                 # (Cin, 8*Cout)
    y = jnp.dot(x, w, preferred_element_type=jnp.float32)   # MXU: (tm, 8*Cout)
    y = y * scale_ref[...] + shift_ref[...]            # folded BN + conv bias
    o_ref[...] = jnp.maximum(y, 0.0).astype(o_ref.dtype)    # ReLU


def _pick_row_tile(m, row_bytes, max_tile_rows=None):
    """Largest multiple-of-8 divisor of m whose in+out tile fits a VMEM budget."""
    try:
        vmem_bytes = pltpu.get_tpu_info().vmem_capacity_bytes
    except Exception:  # pragma: no cover - conservative fallback (v7x per-TC VMEM)
        vmem_bytes = 64 * 1024 * 1024
    # in + out tiles, double-buffered, must stay well under the scoped limit.
    budget = vmem_bytes // 16
    cap = max(8, budget // max(row_bytes, 1))
    if max_tile_rows is not None:
        cap = min(cap, max_tile_rows)
    cap = min(cap, m)
    cap = (cap // 8) * 8
    t = cap
    while t >= 8:
        if m % t == 0:
            return t
        t -= 8
    return m  # tiny m: a full-extent block is always legal


# ----------------------------------------------------------------------------
# Wrapper: layout plumbing + pallas_call.
# ----------------------------------------------------------------------------
def upsample3d_block(x, weight, bias, gamma, beta, running_mean, running_var,
                     *, eps=1e-5, max_tile_rows=None):
    """Forward of Upsample3DBlock (inference-mode BatchNorm).

    x:      (N, Cin, D, H, W)
    weight: (Cin, Cout, 2, 2, 2)   -- PyTorch ConvTranspose3d layout
    bias, gamma, beta, running_mean, running_var: (Cout,)
    returns (N, Cout, 2D, 2H, 2W)
    """
    N, Cin, D, H, W = x.shape
    Cin_w, Cout, kD, kH, kW = weight.shape
    assert Cin_w == Cin and (kD, kH, kW) == (2, 2, 2), "kernel_size/stride must be 2"

    M = N * D * H * W
    C8 = 8 * Cout

    # ---- layout plumbing (wrapper side, not compute) ----
    # voxels-as-rows, channels-last: (M, Cin)
    x_mat = jnp.transpose(x, (0, 2, 3, 4, 1)).reshape(M, Cin)
    # weight as (Cin, tap*Cout) with tap = kd*4 + kh*2 + kw
    w_mat = jnp.transpose(weight, (0, 2, 3, 4, 1)).reshape(Cin, C8)

    # Fold eval-mode BatchNorm3d (and the ConvTranspose bias) into scale/shift.
    # TODO(synk): training-mode BatchNorm3d (batch statistics) would need a
    #             second reduction pass; inference semantics implemented here.
    inv_std = jax.lax.rsqrt(running_var.astype(jnp.float32) + jnp.float32(eps))
    scale = gamma.astype(jnp.float32) * inv_std                                # (Cout,)
    shift = (beta.astype(jnp.float32)
             + (bias.astype(jnp.float32) - running_mean.astype(jnp.float32)) * scale)
    scale_row = jnp.tile(scale, 8).reshape(1, C8)      # per output column
    shift_row = jnp.tile(shift, 8).reshape(1, C8)

    row_bytes = 4 * (Cin + C8)                         # one f32 in-row + out-row
    tm = _pick_row_tile(M, row_bytes, max_tile_rows)
    grid = (M // tm,)

    y = pl.pallas_call(
        _upsample3d_kernel,
        out_shape=jax.ShapeDtypeStruct((M, C8), x.dtype),
        grid_spec=pltpu.PrefetchScalarGridSpec(
            num_scalar_prefetch=0,
            grid=grid,
            in_specs=[
                pl.BlockSpec((tm, Cin), lambda i: (i, 0)),   # input row tile
                pl.BlockSpec((Cin, C8), lambda i: (0, 0)),   # full weight, resident
                pl.BlockSpec((1, C8), lambda i: (0, 0)),     # scale (broadcast)
                pl.BlockSpec((1, C8), lambda i: (0, 0)),     # shift (broadcast)
            ],
            out_specs=pl.BlockSpec((tm, C8), lambda i: (i, 0)),
        ),
        compiler_params=pltpu.CompilerParams(
            dimension_semantics=("parallel",),   # independent tiles -> megacore-shardable
        ),
    )(x_mat, w_mat, scale_row, shift_row)

    # depth-to-space: (N, D, H, W, kd, kh, kw, Cout) -> (N, Cout, 2D, 2H, 2W)
    y = y.reshape(N, D, H, W, 2, 2, 2, Cout)
    y = jnp.transpose(y, (0, 7, 1, 4, 2, 5, 3, 6))
    return y.reshape(N, Cout, 2 * D, 2 * H, 2 * W)


# ----------------------------------------------------------------------------
# Independent pure-JAX reference (input-dilated regular conv).
# ----------------------------------------------------------------------------
def _reference(x, weight, bias, gamma, beta, running_mean, running_var, eps=1e-5):
    w_flip = weight[:, :, ::-1, ::-1, ::-1]                  # flip spatial taps
    w_conv = jnp.transpose(w_flip, (1, 0, 2, 3, 4))          # (Cout, Cin, 2, 2, 2)
    y = jax.lax.conv_general_dilated(
        x.astype(jnp.float32), w_conv.astype(jnp.float32),
        window_strides=(1, 1, 1),
        padding=[(1, 1), (1, 1), (1, 1)],
        lhs_dilation=(2, 2, 2),
        dimension_numbers=("NCDHW", "OIDHW", "NCDHW"))
    y = y + bias.reshape(1, -1, 1, 1, 1)
    inv_std = jax.lax.rsqrt(running_var + eps)
    y = ((y - running_mean.reshape(1, -1, 1, 1, 1))
         * (gamma * inv_std).reshape(1, -1, 1, 1, 1)
         + beta.reshape(1, -1, 1, 1, 1))
    return jnp.maximum(y, 0.0)


if __name__ == "__main__":
    key = jax.random.PRNGKey(0)
    ks = jax.random.split(key, 7)

    N, Cin, Cout = 2, 8, 4
    D = H = W = 8                                  # output spatial = 16^3

    x = jax.random.normal(ks[0], (N, Cin, D, H, W), dtype=jnp.float32)
    weight = 0.1 * jax.random.normal(ks[1], (Cin, Cout, 2, 2, 2), dtype=jnp.float32)
    bias = 0.1 * jax.random.normal(ks[2], (Cout,), dtype=jnp.float32)
    gamma = 1.0 + 0.1 * jax.random.normal(ks[3], (Cout,), dtype=jnp.float32)
    beta = 0.1 * jax.random.normal(ks[4], (Cout,), dtype=jnp.float32)
    running_mean = 0.1 * jax.random.normal(ks[5], (Cout,), dtype=jnp.float32)
    running_var = jnp.abs(1.0 + 0.1 * jax.random.normal(ks[6], (Cout,), dtype=jnp.float32))

    out = upsample3d_block(x, weight, bias, gamma, beta, running_mean, running_var,
                           max_tile_rows=256)      # force a multi-step grid at demo size
    out = jax.block_until_ready(out)

    ref = _reference(x, weight, bias, gamma, beta, running_mean, running_var)
    assert out.shape == (N, Cout, 2 * D, 2 * H, 2 * W), out.shape
    assert jnp.allclose(out, ref, rtol=1e-4, atol=1e-4), float(jnp.max(jnp.abs(out - ref)))

    print("KERNEL_OK")
</pallas_src>

<mosaic_0001>
module attributes {stable_mosaic.version = 11 : i64} {
  func.func @_upsample3d_kernel(%arg0: i32, %arg1: memref<256x8xf32, #tpu.memory_space<vmem>>, %arg2: memref<8x32xf32, #tpu.memory_space<vmem>>, %arg3: memref<1x32xf32, #tpu.memory_space<vmem>>, %arg4: memref<1x32xf32, #tpu.memory_space<vmem>>, %arg5: memref<256x32xf32, #tpu.memory_space<vmem>>) attributes {dimension_semantics = [#tpu.dimension_semantics<parallel>], iteration_bounds = array<i64: 4>, scalar_prefetch = 0 : i64, scratch_operands = 0 : i64, tpu.core_type = #tpu.core_type<tc>, window_params = [{transform_indices = @transform_0, window_bounds = array<i64: 256, 8>}, {pipeline_mode = #tpu.pipeline_mode<synchronous>, transform_indices = @transform_1, window_bounds = array<i64: 8, 32>}, {pipeline_mode = #tpu.pipeline_mode<synchronous>, transform_indices = @transform_2, window_bounds = array<i64: 1, 32>}, {pipeline_mode = #tpu.pipeline_mode<synchronous>, transform_indices = @transform_3, window_bounds = array<i64: 1, 32>}, {transform_indices = @transform_4, window_bounds = array<i64: 256, 32>}]} {
    %c0 = arith.constant 0 : index
    %c0_0 = arith.constant 0 : index
    %0 = vector.load %arg1[%c0, %c0_0] : memref<256x8xf32, #tpu.memory_space<vmem>>, vector<256x8xf32>
    %c0_1 = arith.constant 0 : index
    %c0_2 = arith.constant 0 : index
    %1 = vector.load %arg2[%c0_1, %c0_2] : memref<8x32xf32, #tpu.memory_space<vmem>>, vector<8x32xf32>
    %cst = arith.constant dense<0.000000e+00> : vector<256x32xf32>
    %2 = tpu.matmul %0, %1, %cst {dimension_numbers = #tpu.dot_dimension_numbers<[1], [0], [0], [1], [0, 0, 1, 1], [], []>} : vector<256x8xf32>, vector<8x32xf32>, vector<256x32xf32> -> vector<256x32xf32>
    %c0_3 = arith.constant 0 : index
    %c0_4 = arith.constant 0 : index
    %3 = vector.load %arg3[%c0_3, %c0_4] : memref<1x32xf32, #tpu.memory_space<vmem>>, vector<1x32xf32>
    %4 = vector.broadcast %3 : vector<1x32xf32> to vector<256x32xf32>
    %5 = arith.mulf %2, %4 : vector<256x32xf32>
    %c0_5 = arith.constant 0 : index
    %c0_6 = arith.constant 0 : index
    %6 = vector.load %arg4[%c0_5, %c0_6] : memref<1x32xf32, #tpu.memory_space<vmem>>, vector<1x32xf32>
    %7 = vector.broadcast %6 : vector<1x32xf32> to vector<256x32xf32>
    %8 = arith.addf %5, %7 : vector<256x32xf32>
    %cst_7 = arith.constant 0.000000e+00 : f32
    %9 = vector.broadcast %cst_7 : f32 to vector<256x32xf32>
    %10 = arith.maximumf %8, %9 : vector<256x32xf32>
    %c0_8 = arith.constant 0 : index
    %c0_9 = arith.constant 0 : index
    %11 = vector.load %arg5[%c0_8, %c0_9] : memref<256x32xf32, #tpu.memory_space<vmem>>, vector<256x32xf32>
    tpu.vector_store %arg5[%c0_8, %c0_9], %10 {strides = array<i32>} : memref<256x32xf32, #tpu.memory_space<vmem>>, vector<256x32xf32>,
    return
  }
  func.func @transform_0(%arg0: i32) -> (i32, i32) {
    %c0_i32 = arith.constant 0 : i32
    %c0_i32_0 = arith.constant 0 : i32
    return %arg0, %c0_i32 : i32, i32
  }
  func.func @transform_1(%arg0: i32) -> (i32, i32) {
    %c0_i32 = arith.constant 0 : i32
    %c0_i32_0 = arith.constant 0 : i32
    %c0_i32_1 = arith.constant 0 : i32
    return %c0_i32, %c0_i32_0 : i32, i32
  }
  func.func @transform_2(%arg0: i32) -> (i32, i32) {
    %c0_i32 = arith.constant 0 : i32
    %c0_i32_0 = arith.constant 0 : i32
    %c0_i32_1 = arith.constant 0 : i32
    return %c0_i32, %c0_i32_0 : i32, i32
  }
  func.func @transform_3(%arg0: i32) -> (i32, i32) {
    %c0_i32 = arith.constant 0 : i32
    %c0_i32_0 = arith.constant 0 : i32
    %c0_i32_1 = arith.constant 0 : i32
    return %c0_i32, %c0_i32_0 : i32, i32
  }
  func.func @transform_4(%arg0: i32) -> (i32, i32) {
    %c0_i32 = arith.constant 0 : i32
    %c0_i32_0 = arith.constant 0 : i32
    return %arg0, %c0_i32 : i32, i32
  }
}

</mosaic_0001>

<bundles_post_ra>
// kernel: tpu_custom_call.1
= control target key start
LH: loop header
LB: loop body
LE: loop exit
PB: predicated region body
PF: predicated region fallthrough
CT: control target
= control target key end

     0   :  { %s926_s15 = smov 0   ;;  %s1159_s0 = inlined_call_operand.vmem [shape: f32[1024,8], index: 0, kind: input, shape index: {}]   ;;  %s1160_s1 = inlined_call_operand.vmem [shape: f32[8,32], index: 1, kind: input, shape index: {}]   ;;  %s1161_s2 = inlined_call_operand.vmem [shape: f32[1,32], index: 2, kind: input, shape index: {}]   ;;  %s1162_s3 = inlined_call_operand.vmem [shape: f32[1,32], index: 3, kind: input, shape index: {}]   ;;  %s1163_s4 = inlined_call_operand.vmem [shape: f32[1024,32], index: 4, kind: output, shape index: {}]  }
   0x1 LB: > { %s755_s16 = sadd.s32 4294967295, %s899_s15   ;;  %p759_p0 = scmp.ge.s32.totalorder %s899_s15, 1  ;;  %s899_s15 = sphi %s926_s15, %s14_s15  }
   0x2   : > { %p163_p1 = scmp.lt.s32.totalorder %s899_s15, 5 }
   0x4   : > { %p164_p2 = pnand %p759_p0, %p163_p1 }
   0x5   : > { %v233_v0 = vld [vmem:[%s1160_s1] sm:$0xff] (!%p164_p2)  ;;  %s760_s19 = sshll.u32 (!%p164_p2), %s755_s16, 5  ;;  %vm234_vm0 = vcmask (!%p164_p2), 64512   ;;  %vm666_vm1 = vcmask (!%p164_p2), 261120  }
   0x6   : > { %167 = sbr.rel (%p164_p2) target bundleno = 267 (0x10b), region = 36  ;;  %833 = vmatprep.subr.mxu0 (!%p164_p2), %v233_v0  ;;  %883 = vmatprep.subr.mxu1 (!%p164_p2), %v233_v0  ;;  %p190_p3 = scmp.lt.s32.totalorder (!%p164_p2), %s760_s19, 127  ;;  %v1014_v33 = vld [vmem:[%s1161_s2] ss:$0 sm:$0xff] (!%p164_p2) }
   0x7   : > { %834 = vmatpush3.msra.mxu0 (!%p164_p2), %v233_v0  ;;  %884 = vmatpush3.msra.mxu1 (!%p164_p2), %v233_v0  ;;  %v1019_v35 = vld [vmem:[%s1162_s3] ss:$0 sm:$0xff] (!%p164_p2) }
   0xd   : > { %s1165_s19 = smov (!%p190_p3, %s760_s19), 127 }
   0xe   : > { %s761_s20 = sshll.u32 %s1165_s19, 3 }
   0xf   : > { %s945_s23 = scalar_lea.vmem %s1159_s0, %s761_s20  ;;  %s1032_s30 = scalar_lea.vmem %s1163_s4, %s761_s20 }
  0x10   : > { %v201_v1 = vld [vmem:[%s945_s23] sm:$0xff]  ;;  %v202_v3 = vld [vmem:[%s945_s23 + $0x8] sm:$0xff]  ;;  %v203_v5 = vld [vmem:[%s945_s23 + $0x10] sm:$0xff] }
  0x11   : > { %v217_v2 = vld [vmem:[%s945_s23 + $0x80] sm:$0xff]  ;;  %835 = vmatprep.mubr.msk.f32.mxu0 %vm234_vm0, %v201_v1  ;;  %v218_v4 = vld [vmem:[%s945_s23 + $0x88] sm:$0xff]  ;;  %v219_v6 = vld [vmem:[%s945_s23 + $0x90] sm:$0xff] }
  0x12   : > { %859 = vmatprep.mubr.msk.f32.mxu1 %vm234_vm0, %v217_v2  ;;  %836 = vmatmul.mubr.msk.f32.vlgmr.msra.gmra.mrb[0].mxu0 %vm234_vm0, %v202_v3  ;;  %v204_v7 = vld [vmem:[%s945_s23 + $0x18] sm:$0xff]  ;;  %v205_v9 = vld [vmem:[%s945_s23 + $0x20] sm:$0xff]  ;;  %v206_v11 = vld [vmem:[%s945_s23 + $0x28] sm:$0xff] }
  0x13   : > { %860 = vmatmul.mubr.msk.f32.vlgmr.msra.gmra.mrb[0].mxu1 %vm234_vm0, %v218_v4  ;;  %838 = vmatprep.mubr.msk.f32.mxu0 %vm234_vm0, %v203_v5  ;;  %v220_v8 = vld [vmem:[%s945_s23 + $0x98] sm:$0xff]  ;;  %v221_v10 = vld [vmem:[%s945_s23 + $0xa0] sm:$0xff]  ;;  %v222_v12 = vld [vmem:[%s945_s23 + $0xa8] sm:$0xff] }
  0x14   : > { %862 = vmatprep.mubr.msk.f32.mxu1 %vm234_vm0, %v219_v6  ;;  %v207_v13 = vld [vmem:[%s945_s23 + $0x30] sm:$0xff]  ;;  %v208_v15 = vld [vmem:[%s945_s23 + $0x38] sm:$0xff]  ;;  %v209_v17 = vld [vmem:[%s945_s23 + $0x40] sm:$0xff] }
  0x15   : > { %v223_v14 = vld [vmem:[%s945_s23 + $0xb0] sm:$0xff]  ;;  %v224_v16 = vld [vmem:[%s945_s23 + $0xb8] sm:$0xff]  ;;  %v225_v18 = vld [vmem:[%s945_s23 + $0xc0] sm:$0xff] }
  0x16   : > { %839 = vmatmul.mubr.msk.f32.gmra.mrb[2].mxu0 %vm234_vm0, %v204_v7  ;;  %v210_v19 = vld [vmem:[%s945_s23 + $0x48] sm:$0xff]  ;;  %v211_v21 = vld [vmem:[%s945_s23 + $0x50] sm:$0xff]  ;;  %v212_v23 = vld [vmem:[%s945_s23 + $0x58] sm:$0xff] }
  0x17   : > { %863 = vmatmul.mubr.msk.f32.gmra.mrb[2].mxu1 %vm234_vm0, %v220_v8  ;;  %841 = vmatprep.mubr.msk.f32.mxu0 %vm234_vm0, %v205_v9  ;;  %v226_v20 = vld [vmem:[%s945_s23 + $0xc8] sm:$0xff]  ;;  %v227_v22 = vld [vmem:[%s945_s23 + $0xd0] sm:$0xff]  ;;  %v228_v24 = vld [vmem:[%s945_s23 + $0xd8] sm:$0xff] }
  0x18   : > { %865 = vmatprep.mubr.msk.f32.mxu1 %vm234_vm0, %v221_v10  ;;  %v213_v25 = vld [vmem:[%s945_s23 + $0x60] sm:$0xff]  ;;  %v214_v27 = vld [vmem:[%s945_s23 + $0x68] sm:$0xff]  ;;  %v215_v29 = vld [vmem:[%s945_s23 + $0x70] sm:$0xff] }
  0x19   : > { %v229_v26 = vld [vmem:[%s945_s23 + $0xe0] sm:$0xff]  ;;  %v230_v28 = vld [vmem:[%s945_s23 + $0xe8] sm:$0xff]  ;;  %v231_v30 = vld [vmem:[%s945_s23 + $0xf0] sm:$0xff] }
  0x1a   : > { %842 = vmatmul.mubr.msk.f32.gmra.mrb[4].mxu0 %vm234_vm0, %v206_v11  ;;  %v216_v31 = vld [vmem:[%s945_s23 + $0x78] sm:$0xff] }
  0x1b   : > { %866 = vmatmul.mubr.msk.f32.gmra.mrb[4].mxu1 %vm234_vm0, %v222_v12  ;;  %844 = vmatprep.mubr.msk.f32.mxu0 %vm234_vm0, %v207_v13  ;;  %v232_v32 = vld [vmem:[%s945_s23 + $0xf8] sm:$0xff] }
  0x1c   : > { %868 = vmatprep.mubr.msk.f32.mxu1 %vm234_vm0, %v223_v14 }
  0x1e   : > { %845 = vmatmul.mubr.msk.f32.gmra.mrb[6].mxu0 %vm234_vm0, %v208_v15 }
  0x1f   : > { %869 = vmatmul.mubr.msk.f32.gmra.mrb[6].mxu1 %vm234_vm0, %v224_v16  ;;  %847 = vmatprep.mubr.msk.f32.mxu0 %vm234_vm0, %v209_v17 }
  0x20   : > { %871 = vmatprep.mubr.msk.f32.mxu1 %vm234_vm0, %v225_v18 }
  0x22   : > { %848 = vmatmul.mubr.msk.f32.gmra.mrb[8].mxu0 %vm234_vm0, %v210_v19 }
  0x23   : > { %872 = vmatmul.mubr.msk.f32.gmra.mrb[8].mxu1 %vm234_vm0, %v226_v20  ;;  %850 = vmatprep.mubr.msk.f32.mxu0 %vm234_vm0, %v211_v21 }
  0x24   : > { %874 = vmatprep.mubr.msk.f32.mxu1 %vm234_vm0, %v227_v22 }
  0x26   : > { %851 = vmatmul.mubr.msk.f32.gmra.mrb[10].mxu0 %vm234_vm0, %v212_v23 }
  0x27   : > { %875 = vmatmul.mubr.msk.f32.gmra.mrb[10].mxu1 %vm234_vm0, %v228_v24  ;;  %853 = vmatprep.mubr.msk.f32.mxu0 %vm234_vm0, %v213_v25 }
  0x28   : > { %877 = vmatprep.mubr.msk.f32.mxu1 %vm234_vm0, %v229_v26 }
  0x2a   : > { %854 = vmatmul.mubr.msk.f32.gmra.mrb[12].mxu0 %vm234_vm0, %v214_v27 }
  0x2b   : > { %878 = vmatmul.mubr.msk.f32.gmra.mrb[12].mxu1 %vm234_vm0, %v230_v28  ;;  %856 = vmatprep.mubr.msk.f32.mxu0 %vm234_vm0, %v215_v29 }
  0x2c   : > { %880 = vmatprep.mubr.msk.f32.mxu1 %vm234_vm0, %v231_v30 }
  0x2e   : > { %857 = vmatmul.mubr.msk.f32.gmra.mrb[14].mxu0 %vm234_vm0, %v216_v31 }
  0x2f   : > { %881 = vmatmul.mubr.msk.f32.gmra.mrb[14].mxu1 %vm234_vm0, %v232_v32 }
  0xe5   : > { %v837_v34 = vpop.f32.mrb[0].mxu0 }
  0xe6   : > { %v861_v36 = vpop.f32.mrb[0].mxu1  ;;  %v564_v37 = vmul.f32 %v837_v34, %v1014_v33  ;;  %v397_v39 = vpop.f32.mrb[1].mxu0 }
  0xe7   : > { %v580_v38 = vmul.f32 %v861_v36, %v1014_v33  ;;  %v477_v40 = vpop.f32.mrb[1].mxu1  ;;  %v563_v41 = vmul.f32 %v1014_v33, %v397_v39 }
  0xe8   : > { %v579_v42 = vmul.f32 %v1014_v33, %v477_v40  ;;  %v603_v43 = vadd.f32 %v1019_v35, %v564_v37 }
  0xe9   : > { %v619_v44 = vadd.f32 %v1019_v35, %v580_v38  ;;  %v602_v45 = vadd.f32 %v1019_v35, %v563_v41  ;;  %v840_v47 = vpop.f32.mrb[2].mxu0 }
  0xea   : > { %v618_v46 = vadd.f32 %v1019_v35, %v579_v42  ;;  %v864_v48 = vpop.f32.mrb[2].mxu1  ;;  %v635_v49 = vmax.f32 %v603_v43, 0.0  ;;  %v566_v51 = vmul.f32 %v840_v47, %v1014_v33  ;;  %v407_v53 = vpop.f32.mrb[3].mxu0 }
  0xeb   : > { %v651_v50 = vmax.f32 %v619_v44, 0.0  ;;  %v582_v52 = vmul.f32 %v864_v48, %v1014_v33  ;;  %v487_v54 = vpop.f32.mrb[3].mxu1  ;;  %v634_v55 = vmax.f32 %v602_v45, 0.0  ;;  %v565_v57 = vmul.f32 %v1014_v33, %v407_v53 }
  0xec   : > { %v650_v56 = vmax.f32 %v618_v46, 0.0  ;;  %v581_v58 = vmul.f32 %v1014_v33, %v487_v54  ;;  %668 = vst.msk [vmem:[%s1032_s30 + $0x8] sm:$0xff] %vm666_vm1, %v635_v49  ;;  %v605_v59 = vadd.f32 %v1019_v35, %v566_v51 }
  0xed   : > { %684 = vst.msk [vmem:[%s1032_s30 + $0x88] sm:$0xff] %vm666_vm1, %v651_v50  ;;  %v621_v60 = vadd.f32 %v1019_v35, %v582_v52  ;;  %667 = vst.msk [vmem:[%s1032_s30] sm:$0xff] %vm666_vm1, %v634_v55  ;;  %v604_v61 = vadd.f32 %v1019_v35, %v565_v57  ;;  %v843_v63 = vpop.f32.mrb[4].mxu0 }
  0xee   : > { %683 = vst.msk [vmem:[%s1032_s30 + $0x80] sm:$0xff] %vm666_vm1, %v650_v56  ;;  %v620_v62 = vadd.f32 %v1019_v35, %v581_v58  ;;  %v867_v0 = vpop.f32.mrb[4].mxu1  ;;  %v637_v1 = vmax.f32 %v605_v59, 0.0  ;;  %v568_v3 = vmul.f32 %v843_v63, %v1014_v33  ;;  %v417_v5 = vpop.f32.mrb[5].mxu0 }
  0xef   : > { %v653_v2 = vmax.f32 %v621_v60, 0.0  ;;  %v584_v4 = vmul.f32 %v867_v0, %v1014_v33  ;;  %v497_v6 = vpop.f32.mrb[5].mxu1  ;;  %v636_v7 = vmax.f32 %v604_v61, 0.0  ;;  %v567_v9 = vmul.f32 %v1014_v33, %v417_v5 }
  0xf0   : > { %v652_v8 = vmax.f32 %v620_v62, 0.0  ;;  %v583_v10 = vmul.f32 %v1014_v33, %v497_v6  ;;  %670 = vst.msk [vmem:[%s1032_s30 + $0x18] sm:$0xff] %vm666_vm1, %v637_v1  ;;  %v607_v11 = vadd.f32 %v1019_v35, %v568_v3 }
  0xf1   : > { %686 = vst.msk [vmem:[%s1032_s30 + $0x98] sm:$0xff] %vm666_vm1, %v653_v2  ;;  %v623_v12 = vadd.f32 %v1019_v35, %v584_v4  ;;  %669 = vst.msk [vmem:[%s1032_s30 + $0x10] sm:$0xff] %vm666_vm1, %v636_v7  ;;  %v606_v13 = vadd.f32 %v1019_v35, %v567_v9  ;;  %v846_v15 = vpop.f32.mrb[6].mxu0 }
  0xf2   : > { %685 = vst.msk [vmem:[%s1032_s30 + $0x90] sm:$0xff] %vm666_vm1, %v652_v8  ;;  %v622_v14 = vadd.f32 %v1019_v35, %v583_v10  ;;  %v870_v16 = vpop.f32.mrb[6].mxu1  ;;  %v639_v17 = vmax.f32 %v607_v11, 0.0  ;;  %v570_v19 = vmul.f32 %v846_v15, %v1014_v33  ;;  %v427_v21 = vpop.f32.mrb[7].mxu0 }
  0xf3   : > { %v655_v18 = vmax.f32 %v623_v12, 0.0  ;;  %v586_v20 = vmul.f32 %v870_v16, %v1014_v33  ;;  %v507_v22 = vpop.f32.mrb[7].mxu1  ;;  %v638_v23 = vmax.f32 %v606_v13, 0.0  ;;  %v569_v25 = vmul.f32 %v1014_v33, %v427_v21 }
  0xf4   : > { %v654_v24 = vmax.f32 %v622_v14, 0.0  ;;  %v585_v26 = vmul.f32 %v1014_v33, %v507_v22  ;;  %672 = vst.msk [vmem:[%s1032_s30 + $0x28] sm:$0xff] %vm666_vm1, %v639_v17  ;;  %v609_v27 = vadd.f32 %v1019_v35, %v570_v19 }
  0xf5   : > { %688 = vst.msk [vmem:[%s1032_s30 + $0xa8] sm:$0xff] %vm666_vm1, %v655_v18  ;;  %v625_v28 = vadd.f32 %v1019_v35, %v586_v20  ;;  %671 = vst.msk [vmem:[%s1032_s30 + $0x20] sm:$0xff] %vm666_vm1, %v638_v23  ;;  %v608_v29 = vadd.f32 %v1019_v35, %v569_v25  ;;  %v849_v31 = vpop.f32.mrb[8].mxu0 }
  0xf6   : > { %687 = vst.msk [vmem:[%s1032_s30 + $0xa0] sm:$0xff] %vm666_vm1, %v654_v24  ;;  %v624_v30 = vadd.f32 %v1019_v35, %v585_v26  ;;  %v873_v32 = vpop.f32.mrb[8].mxu1  ;;  %v641_v34 = vmax.f32 %v609_v27, 0.0  ;;  %v572_v37 = vmul.f32 %v849_v31, %v1014_v33  ;;  %v437_v39 = vpop.f32.mrb[9].mxu0 }
  0xf7   : > { %v657_v36 = vmax.f32 %v625_v28, 0.0  ;;  %v588_v38 = vmul.f32 %v873_v32, %v1014_v33  ;;  %v517_v40 = vpop.f32.mrb[9].mxu1  ;;  %v640_v41 = vmax.f32 %v608_v29, 0.0  ;;  %v571_v43 = vmul.f32 %v1014_v33, %v437_v39 }
  0xf8   : > { %v656_v42 = vmax.f32 %v624_v30, 0.0  ;;  %v587_v44 = vmul.f32 %v1014_v33, %v517_v40  ;;  %674 = vst.msk [vmem:[%s1032_s30 + $0x38] sm:$0xff] %vm666_vm1, %v641_v34  ;;  %v611_v45 = vadd.f32 %v1019_v35, %v572_v37 }
  0xf9   : > { %690 = vst.msk [vmem:[%s1032_s30 + $0xb8] sm:$0xff] %vm666_vm1, %v657_v36  ;;  %v627_v46 = vadd.f32 %v1019_v35, %v588_v38  ;;  %673 = vst.msk [vmem:[%s1032_s30 + $0x30] sm:$0xff] %vm666_vm1, %v640_v41  ;;  %v610_v47 = vadd.f32 %v1019_v35, %v571_v43  ;;  %v852_v49 = vpop.f32.mrb[10].mxu0 }
  0xfa   : > { %689 = vst.msk [vmem:[%s1032_s30 + $0xb0] sm:$0xff] %vm666_vm1, %v656_v42  ;;  %v626_v48 = vadd.f32 %v1019_v35, %v587_v44  ;;  %v876_v50 = vpop.f32.mrb[10].mxu1  ;;  %v643_v51 = vmax.f32 %v611_v45, 0.0  ;;  %v574_v53 = vmul.f32 %v852_v49, %v1014_v33  ;;  %v447_v55 = vpop.f32.mrb[11].mxu0 }
  0xfb   : > { %v659_v52 = vmax.f32 %v627_v46, 0.0  ;;  %v590_v54 = vmul.f32 %v876_v50, %v1014_v33  ;;  %v527_v56 = vpop.f32.mrb[11].mxu1  ;;  %v642_v57 = vmax.f32 %v610_v47, 0.0  ;;  %v573_v59 = vmul.f32 %v1014_v33, %v447_v55 }
  0xfc   : > { %v658_v58 = vmax.f32 %v626_v48, 0.0  ;;  %v589_v60 = vmul.f32 %v1014_v33, %v527_v56  ;;  %676 = vst.msk [vmem:[%s1032_s30 + $0x48] sm:$0xff] %vm666_vm1, %v643_v51  ;;  %v613_v61 = vadd.f32 %v1019_v35, %v574_v53 }
  0xfd   : > { %692 = vst.msk [vmem:[%s1032_s30 + $0xc8] sm:$0xff] %vm666_vm1, %v659_v52  ;;  %v629_v62 = vadd.f32 %v1019_v35, %v590_v54  ;;  %675 = vst.msk [vmem:[%s1032_s30 + $0x40] sm:$0xff] %vm666_vm1, %v642_v57  ;;  %v612_v63 = vadd.f32 %v1019_v35, %v573_v59  ;;  %v855_v1 = vpop.f32.mrb[12].mxu0 }
  0xfe   : > { %691 = vst.msk [vmem:[%s1032_s30 + $0xc0] sm:$0xff] %vm666_vm1, %v658_v58  ;;  %v628_v0 = vadd.f32 %v1019_v35, %v589_v60  ;;  %v879_v2 = vpop.f32.mrb[12].mxu1  ;;  %v645_v3 = vmax.f32 %v613_v61, 0.0  ;;  %v576_v5 = vmul.f32 %v855_v1, %v1014_v33  ;;  %v457_v7 = vpop.f32.mrb[13].mxu0 }
  0xff   : > { %v661_v4 = vmax.f32 %v629_v62, 0.0  ;;  %v592_v6 = vmul.f32 %v879_v2, %v1014_v33  ;;  %v537_v8 = vpop.f32.mrb[13].mxu1  ;;  %v644_v9 = vmax.f32 %v612_v63, 0.0  ;;  %v575_v11 = vmul.f32 %v1014_v33, %v457_v7 }
 0x100   : > { %v660_v10 = vmax.f32 %v628_v0, 0.0  ;;  %v591_v12 = vmul.f32 %v1014_v33, %v537_v8  ;;  %678 = vst.msk [vmem:[%s1032_s30 + $0x58] sm:$0xff] %vm666_vm1, %v645_v3  ;;  %v615_v13 = vadd.f32 %v1019_v35, %v576_v5 }
 0x101   : > { %694 = vst.msk [vmem:[%s1032_s30 + $0xd8] sm:$0xff] %vm666_vm1, %v661_v4  ;;  %v631_v14 = vadd.f32 %v1019_v35, %v592_v6  ;;  %677 = vst.msk [vmem:[%s1032_s30 + $0x50] sm:$0xff] %vm666_vm1, %v644_v9  ;;  %v614_v15 = vadd.f32 %v1019_v35, %v575_v11  ;;  %v858_v17 = vpop.f32.mrb[14].mxu0 }
 0x102   : > { %693 = vst.msk [vmem:[%s1032_s30 + $0xd0] sm:$0xff] %vm666_vm1, %v660_v10  ;;  %v630_v16 = vadd.f32 %v1019_v35, %v591_v12  ;;  %v882_v18 = vpop.f32.mrb[14].mxu1  ;;  %v647_v19 = vmax.f32 %v615_v13, 0.0  ;;  %v578_v21 = vmul.f32 %v858_v17, %v1014_v33  ;;  %v467_v23 = vpop.f32.mrb[15].mxu0 }
 0x103   : > { %v663_v20 = vmax.f32 %v631_v14, 0.0  ;;  %v594_v22 = vmul.f32 %v882_v18, %v1014_v33  ;;  %v547_v24 = vpop.f32.mrb[15].mxu1  ;;  %v646_v25 = vmax.f32 %v614_v15, 0.0  ;;  %v577_v27 = vmul.f32 %v1014_v33, %v467_v23 }
 0x104   : > { %v662_v26 = vmax.f32 %v630_v16, 0.0  ;;  %v593_v28 = vmul.f32 %v1014_v33, %v547_v24  ;;  %680 = vst.msk [vmem:[%s1032_s30 + $0x68] sm:$0xff] %vm666_vm1, %v647_v19  ;;  %v617_v29 = vadd.f32 %v1019_v35, %v578_v21 }
 0x105   : > { %696 = vst.msk [vmem:[%s1032_s30 + $0xe8] sm:$0xff] %vm666_vm1, %v663_v20  ;;  %v633_v30 = vadd.f32 %v1019_v35, %v594_v22  ;;  %679 = vst.msk [vmem:[%s1032_s30 + $0x60] sm:$0xff] %vm666_vm1, %v646_v25  ;;  %v616_v31 = vadd.f32 %v1019_v35, %v577_v27 }
 0x106   : > { %695 = vst.msk [vmem:[%s1032_s30 + $0xe0] sm:$0xff] %vm666_vm1, %v662_v26  ;;  %v632_v32 = vadd.f32 %v1019_v35, %v593_v28  ;;  %v649_v34 = vmax.f32 %v617_v29, 0.0 }
 0x107   : > { %v665_v36 = vmax.f32 %v633_v30, 0.0  ;;  %v648_v33 = vmax.f32 %v616_v31, 0.0 }
 0x108   : > { %v664_v37 = vmax.f32 %v632_v32, 0.0  ;;  %682 = vst.msk [vmem:[%s1032_s30 + $0x78] sm:$0xff] %vm666_vm1, %v649_v34 }
 0x109   : > { %698 = vst.msk [vmem:[%s1032_s30 + $0xf8] sm:$0xff] %vm666_vm1, %v665_v36  ;;  %681 = vst.msk [vmem:[%s1032_s30 + $0x70] sm:$0xff] %vm666_vm1, %v648_v33 }
 0x10a   : > { %697 = vst.msk [vmem:[%s1032_s30 + $0xf0] sm:$0xff] %vm666_vm1, %v664_v37 }
 0x10b PF: > { %s14_s15 = sadd.s32 1, %s899_s15  }
 0x10c   : > { %p11_p4 = scmp.ge.s32.totalorder %s14_s15, 6  }
 0x10e   :  { %13 = sbr.rel (!%p11_p4) target bundleno = 1 (0x1), region = 66 }

</bundles_post_ra>
